<compile_context>
chip_gen: v5e
topology: v5e:2x2
jax: 0.10.0
libtpu: 0.0.40
codegen_flags: <defaults>
</compile_context>

<pallas_src>
import functools

import jax
import jax.numpy as jnp
from jax.experimental import pallas as pl
from jax.experimental.pallas import tpu as pltpu


# ---------------------------------------------------------------------------
# Small helpers
# ---------------------------------------------------------------------------

def _round_up(n, m):
    return ((n + m - 1) // m) * m


def _vmem_capacity_bytes():
    """Per-core VMEM capacity; conservative 64 MiB (v7x) if the query fails."""
    try:
        info = pltpu.get_tpu_info()
        cap = int(getattr(info, "vmem_capacity_bytes", 0))
        if cap > 0:
            return cap
    except Exception:
        pass
    return 64 * 1024 * 1024


def _vmem_limit(footprint_bytes):
    """Scoped-VMEM request: ~1.35x footprint, 16 MiB floor, 80%-of-capacity cap."""
    budget = int(0.80 * _vmem_capacity_bytes())
    want = int(1.35 * footprint_bytes) + (2 << 20)
    return int(max(16 << 20, min(budget, want)))


def _pick_hidden_block(H, hb):
    """Largest divisor of H that is a multiple of 256 (else 128) and <= hb."""
    for unit in (256, 128):
        if H % unit == 0:
            b = max(unit, min((hb // unit) * unit, H))
            while H % b != 0:
                b -= unit
            return b
    return H


def _weight_spec(block_shape, index_map, single_buffer):
    # Constant-index (grid-resident) operands: a second pipeline buffer is pure
    # VMEM waste, so request single buffering when the runtime supports it.
    if single_buffer:
        return pl.BlockSpec(block_shape, index_map,
                            pipeline_mode=pl.Buffered(buffer_count=1))
    return pl.BlockSpec(block_shape, index_map)


# ---------------------------------------------------------------------------
# Kernels
# ---------------------------------------------------------------------------

def _ffn_kernel_fused(x_ref, w1_ref, b1_ref, w2_ref, b2_ref, o_ref):
    # One token tile per grid step; W1/W2/b1/b2 stay resident in VMEM.
    x = x_ref[...].astype(jnp.bfloat16)                      # VPU cast, hidden under MXU
    h = jnp.dot(x, w1_ref[...], preferred_element_type=jnp.float32)
    h = jnp.maximum(h + b1_ref[...], 0.0)                    # bias + ReLU in f32
    y = jnp.dot(h.astype(jnp.bfloat16), w2_ref[...],
                preferred_element_type=jnp.float32) + b2_ref[...]
    o_ref[...] = y.astype(o_ref.dtype)
    # TODO(synk): training-mode dropout (pltpu.prng_seed / prng_random_bits) not
    # implemented; inference (eval) dropout == identity.


def _ffn_kernel_streamed(x_ref, w1_ref, b1_ref, w2_ref, b2_ref, o_ref, acc_ref):
    # Grid = (token tiles, hidden blocks).  Hidden axis is a reduction that
    # streams W1/W2 blocks through VMEM; acc_ref is the f32 output accumulator.
    k = pl.program_id(1)

    @pl.when(k == 0)
    def _init():
        acc_ref[...] = jnp.broadcast_to(b2_ref[...], acc_ref.shape)

    x = x_ref[...].astype(jnp.bfloat16)
    h = jnp.dot(x, w1_ref[...], preferred_element_type=jnp.float32)
    h = jnp.maximum(h + b1_ref[...], 0.0)
    acc_ref[...] += jnp.dot(h.astype(jnp.bfloat16), w2_ref[...],
                            preferred_element_type=jnp.float32)

    @pl.when(k == pl.num_programs(1) - 1)
    def _finalize():
        o_ref[...] = acc_ref[...].astype(o_ref.dtype)


# ---------------------------------------------------------------------------
# pallas_call wrappers (jitted; all tiling decisions are static args)
# ---------------------------------------------------------------------------

@functools.partial(jax.jit,
                   static_argnames=("tm", "out_dtype", "single_buffer", "vmem_limit"))
def _ffn_fused(x, w1, b1, w2, b2, *, tm, out_dtype, single_buffer, vmem_limit):
    C = x.shape[-1]
    H = w1.shape[1]
    lead = x.shape[:-1]
    M = 1
    for d in lead:
        M *= d
    x2d = x.reshape(M, C)
    b1r = b1.reshape(1, H).astype(jnp.float32)
    b2r = b2.reshape(1, C).astype(jnp.float32)

    cost = pl.CostEstimate(
        flops=4 * M * C * H, transcendentals=0,
        bytes_accessed=(x2d.size * x2d.dtype.itemsize + w1.size * 2 + w2.size * 2
                        + (H + C) * 4 + M * C * jnp.dtype(out_dtype).itemsize))

    out = pl.pallas_call(
        _ffn_kernel_fused,
        out_shape=jax.ShapeDtypeStruct((M, C), out_dtype),
        grid_spec=pltpu.PrefetchScalarGridSpec(
            num_scalar_prefetch=0,
            grid=(pl.cdiv(M, tm),),
            in_specs=[
                pl.BlockSpec((tm, C), lambda i: (i, 0)),                  # x tile
                _weight_spec((C, H), lambda i: (0, 0), single_buffer),    # W1 (resident)
                _weight_spec((1, H), lambda i: (0, 0), single_buffer),    # b1
                _weight_spec((H, C), lambda i: (0, 0), single_buffer),    # W2 (resident)
                _weight_spec((1, C), lambda i: (0, 0), single_buffer),    # b2
            ],
            out_specs=pl.BlockSpec((tm, C), lambda i: (i, 0)),
        ),
        compiler_params=pltpu.CompilerParams(
            dimension_semantics=("parallel",),
            vmem_limit_bytes=vmem_limit),
        cost_estimate=cost,
    )(x2d, w1, b1r, w2, b2r)
    return out.reshape(*lead, C)


@functools.partial(jax.jit,
                   static_argnames=("tm", "hb", "out_dtype", "single_buffer",
                                    "vmem_limit"))
def _ffn_streamed(x, w1, b1, w2, b2, *, tm, hb, out_dtype, single_buffer,
                  vmem_limit):
    C = x.shape[-1]
    H = w1.shape[1]
    lead = x.shape[:-1]
    M = 1
    for d in lead:
        M *= d
    x2d = x.reshape(M, C)
    b1r = b1.reshape(1, H).astype(jnp.float32)
    b2r = b2.reshape(1, C).astype(jnp.float32)

    cost = pl.CostEstimate(
        flops=4 * M * C * H, transcendentals=0,
        bytes_accessed=(x2d.size * x2d.dtype.itemsize + w1.size * 2 + w2.size * 2
                        + (H + C) * 4 + M * C * jnp.dtype(out_dtype).itemsize))

    out = pl.pallas_call(
        _ffn_kernel_streamed,
        out_shape=jax.ShapeDtypeStruct((M, C), out_dtype),
        grid_spec=pltpu.PrefetchScalarGridSpec(
            num_scalar_prefetch=0,
            grid=(pl.cdiv(M, tm), H // hb),          # reduction (hidden) axis last
            in_specs=[
                pl.BlockSpec((tm, C), lambda i, k: (i, 0)),               # x tile
                pl.BlockSpec((C, hb), lambda i, k: (0, k)),               # W1 col block
                pl.BlockSpec((1, hb), lambda i, k: (0, k)),               # b1 block
                pl.BlockSpec((hb, C), lambda i, k: (k, 0)),               # W2 row block
                _weight_spec((1, C), lambda i, k: (0, 0), single_buffer), # b2 (resident)
            ],
            out_specs=pl.BlockSpec((tm, C), lambda i, k: (i, 0)),
            scratch_shapes=[pltpu.VMEM((tm, C), jnp.float32)],
        ),
        compiler_params=pltpu.CompilerParams(
            dimension_semantics=("parallel", "arbitrary"),
            vmem_limit_bytes=vmem_limit),
        cost_estimate=cost,
    )(x2d, w1, b1r, w2, b2r)
    return out.reshape(*lead, C)


# ---------------------------------------------------------------------------
# Reference (same bf16-matmul / f32-accumulate recipe as the kernel)
# ---------------------------------------------------------------------------

def _reference(x, w1, b1, w2, b2):
    xb = x.astype(jnp.bfloat16)
    h = jnp.dot(xb, w1.astype(jnp.bfloat16),
                preferred_element_type=jnp.float32) + b1.astype(jnp.float32)
    h = jnp.maximum(h, 0.0).astype(jnp.bfloat16)
    return jnp.dot(h, w2.astype(jnp.bfloat16),
                   preferred_element_type=jnp.float32) + b2.astype(jnp.float32)


# ---------------------------------------------------------------------------
# Probe: is single-buffering of resident weights (pl.Buffered(1)) supported?
# ---------------------------------------------------------------------------

_SINGLE_BUFFER_SUPPORTED = None


def _single_buffer_weights_supported():
    global _SINGLE_BUFFER_SUPPORTED
    if _SINGLE_BUFFER_SUPPORTED is None:
        try:
            C, H, Mx = 128, 256, 16
            xp = (jnp.arange(Mx * C, dtype=jnp.float32).reshape(Mx, C) % 7 - 3.0) / 5.0
            w1p = ((jnp.arange(C * H, dtype=jnp.float32).reshape(C, H) % 5 - 2.0)
                   / 11.0).astype(jnp.bfloat16)
            b1p = jnp.linspace(-0.1, 0.1, H, dtype=jnp.float32)
            w2p = ((jnp.arange(H * C, dtype=jnp.float32).reshape(H, C) % 3 - 1.0)
                   / 13.0).astype(jnp.bfloat16)
            b2p = jnp.linspace(-0.1, 0.1, C, dtype=jnp.float32)
            got = _ffn_fused(xp, w1p, b1p, w2p, b2p, tm=Mx, out_dtype=jnp.float32,
                             single_buffer=True, vmem_limit=16 << 20)
            jax.block_until_ready(got)
            want = _reference(xp, w1p, b1p, w2p, b2p)
            _SINGLE_BUFFER_SUPPORTED = bool(
                jnp.allclose(got, want, atol=5e-2, rtol=5e-2))
        except Exception:
            _SINGLE_BUFFER_SUPPORTED = False
    return _SINGLE_BUFFER_SUPPORTED


# ---------------------------------------------------------------------------
# Public entry point
# ---------------------------------------------------------------------------

def feed_forward(x, w1, b1, w2, b2, *, tm=512, hb=512, out_dtype=None,
                 _force_streamed=False):
    """Position-wise MLP: Dropout(relu(x @ W1 + b1) @ W2 + b2), eval mode.

    x: (..., C).  Weights are used in bf16 on the MXU (pass them pre-cast to
    avoid a per-call conversion); accumulation is f32.  out_dtype defaults to
    x.dtype; pass jnp.bfloat16 to halve the output writeback stream.
    """
    C = x.shape[-1]
    H = w1.shape[1]
    assert w1.shape == (C, H) and w2.shape == (H, C)
    assert b1.shape[-1] == H and b2.shape[-1] == C
    if out_dtype is None:
        out_dtype = x.dtype

    # Keep matmul weights in bf16 persistently; no-op when callers pass bf16.
    if w1.dtype != jnp.bfloat16:
        w1 = w1.astype(jnp.bfloat16)
    if w2.dtype != jnp.bfloat16:
        w2 = w2.astype(jnp.bfloat16)

    M = 1
    for d in x.shape[:-1]:
        M *= d
    tm = max(8, (tm // 8) * 8)
    tm_eff = M if M <= tm else tm          # full-dim block for small M, else cdiv grid

    cap = _vmem_capacity_bytes()
    isz_x = jnp.dtype(x.dtype).itemsize
    isz_o = jnp.dtype(out_dtype).itemsize
    single_buffer = _single_buffer_weights_supported()
    wbuf = 1 if single_buffer else 2

    # Resident-weight (fused) VMEM footprint.
    fused_bytes = (2 * tm_eff * C * isz_x            # x tiles (double-buffered)
                   + 2 * tm_eff * C * isz_o          # out tiles
                   + wbuf * 2 * C * H * 2            # W1 + W2 (bf16)
                   + wbuf * 8 * (H + C) * 4          # biases (sublane-padded)
                   + tm_eff * H * (4 + 2)            # hidden intermediate f32 + bf16
                   + tm_eff * C * 2)                 # bf16 copy of x tile
    use_fused = (not _force_streamed
                 and fused_bytes <= int(0.6 * cap)
                 and tm_eff * H * 4 <= (8 << 20))

    if use_fused:
        return _ffn_fused(x, w1, b1, w2, b2, tm=tm_eff, out_dtype=out_dtype,
                          single_buffer=single_buffer,
                          vmem_limit=_vmem_limit(fused_bytes))

    hb_eff = _pick_hidden_block(H, hb)
    streamed_bytes = (2 * tm_eff * C * isz_x
                      + 2 * tm_eff * C * isz_o
                      + 2 * 2 * C * hb_eff * 2       # W1/W2 blocks (bf16, dbl-buf)
                      + 2 * 8 * (hb_eff + C) * 4
                      + tm_eff * C * 4               # f32 accumulator scratch
                      + tm_eff * hb_eff * (4 + 2)
                      + tm_eff * C * 2)
    return _ffn_streamed(x, w1, b1, w2, b2, tm=tm_eff, hb=hb_eff,
                         out_dtype=out_dtype, single_buffer=single_buffer,
                         vmem_limit=_vmem_limit(streamed_bytes))


def init_params(key, n_embed):
    """nn.Linear-style init (uniform +-1/sqrt(fan_in)); weights kept in bf16."""
    hidden = 4 * n_embed
    k1, k2, k3, k4 = jax.random.split(key, 4)
    bound1 = 1.0 / jnp.sqrt(n_embed)
    bound2 = 1.0 / jnp.sqrt(hidden)
    w1 = jax.random.uniform(k1, (n_embed, hidden), jnp.float32, -bound1, bound1)
    b1 = jax.random.uniform(k2, (hidden,), jnp.float32, -bound1, bound1)
    w2 = jax.random.uniform(k3, (hidden, n_embed), jnp.float32, -bound2, bound2)
    b2 = jax.random.uniform(k4, (n_embed,), jnp.float32, -bound2, bound2)
    return w1.astype(jnp.bfloat16), b1, w2.astype(jnp.bfloat16), b2


if __name__ == "__main__":
    key = jax.random.PRNGKey(0)
    n_embed = 96                      # smallest selectbox option
    B, T = 2, 8
    kx, kp, kx2, kx3 = jax.random.split(key, 4)
    x = jax.random.normal(kx, (B, T, n_embed), jnp.float32)
    w1, b1, w2, b2 = init_params(kp, n_embed)

    # 1) Fused weight-resident path, f32 output, single token tile.
    y = feed_forward(x, w1, b1, w2, b2)
    jax.block_until_ready(y)
    assert y.shape == (B, T, n_embed) and y.dtype == jnp.float32
    ref = _reference(x, w1, b1, w2, b2)
    ref_f32 = jnp.maximum(x @ w1.astype(jnp.float32) + b1, 0.0) \
        @ w2.astype(jnp.float32) + b2
    assert jnp.allclose(y, ref, atol=1e-2, rtol=1e-2)
    assert jnp.allclose(y, ref_f32, atol=6e-2, rtol=6e-2)

    # 2) Multi-step grid with a masked tail block (M=600 > tm=512), bf16 output.
    x2 = jax.random.normal(kx2, (2, 300, n_embed), jnp.float32)
    y2 = feed_forward(x2, w1, b1, w2, b2, out_dtype=jnp.bfloat16)
    jax.block_until_ready(y2)
    assert y2.shape == (2, 300, n_embed) and y2.dtype == jnp.bfloat16
    ref2 = _reference(x2, w1, b1, w2, b2)
    assert jnp.allclose(y2.astype(jnp.float32), ref2, atol=3e-2, rtol=3e-2)

    # 3) Weight-streaming fallback (grid reduction over the hidden dim),
    #    exercised explicitly so the large-C path is validated on-device too.
    x3 = jax.random.normal(kx3, (4, 25, n_embed), jnp.float32)
    y3 = feed_forward(x3, w1, b1, w2, b2, hb=128, _force_streamed=True)
    jax.block_until_ready(y3)
    assert y3.shape == (4, 25, n_embed)
    ref3 = _reference(x3, w1, b1, w2, b2)
    assert jnp.allclose(y3, ref3, atol=1e-2, rtol=1e-2)

    print("KERNEL_OK")
</pallas_src>

<mosaic_0001>
module attributes {stable_mosaic.version = 11 : i64} {
  func.func @_ffn_kernel_fused(%arg0: i32, %arg1: memref<16x128xf32, #tpu.memory_space<vmem>>, %arg2: memref<128x256xbf16, #tpu.memory_space<vmem>>, %arg3: memref<1x256xf32, #tpu.memory_space<vmem>>, %arg4: memref<256x128xbf16, #tpu.memory_space<vmem>>, %arg5: memref<1x128xf32, #tpu.memory_space<vmem>>, %arg6: memref<16x128xf32, #tpu.memory_space<vmem>>) attributes {dimension_semantics = [#tpu.dimension_semantics<parallel>], iteration_bounds = array<i64: 1>, scalar_prefetch = 0 : i64, scratch_operands = 0 : i64, tpu.core_type = #tpu.core_type<tc>, window_params = [{transform_indices = @transform_0, window_bounds = array<i64: 16, 128>}, {pipeline_mode = #tpu.pipeline_mode<synchronous>, transform_indices = @transform_1, window_bounds = array<i64: 128, 256>}, {pipeline_mode = #tpu.pipeline_mode<synchronous>, transform_indices = @transform_2, window_bounds = array<i64: 1, 256>}, {pipeline_mode = #tpu.pipeline_mode<synchronous>, transform_indices = @transform_3, window_bounds = array<i64: 256, 128>}, {pipeline_mode = #tpu.pipeline_mode<synchronous>, transform_indices = @transform_4, window_bounds = array<i64: 1, 128>}, {transform_indices = @transform_5, window_bounds = array<i64: 16, 128>}]} {
    %c0 = arith.constant 0 : index
    %c0_0 = arith.constant 0 : index
    %0 = vector.load %arg1[%c0, %c0_0] : memref<16x128xf32, #tpu.memory_space<vmem>>, vector<16x128xf32>
    %1 = arith.truncf %0 : vector<16x128xf32> to vector<16x128xbf16>
    %c0_1 = arith.constant 0 : index
    %c0_2 = arith.constant 0 : index
    %2 = vector.load %arg2[%c0_1, %c0_2] : memref<128x256xbf16, #tpu.memory_space<vmem>>, vector<128x256xbf16>
    %cst = arith.constant dense<0.000000e+00> : vector<16x256xf32>
    %3 = tpu.matmul %1, %2, %cst {dimension_numbers = #tpu.dot_dimension_numbers<[1], [0], [0], [1], [0, 0, 1, 1], [], []>} : vector<16x128xbf16>, vector<128x256xbf16>, vector<16x256xf32> -> vector<16x256xf32>
    %c0_3 = arith.constant 0 : index
    %c0_4 = arith.constant 0 : index
    %4 = vector.load %arg3[%c0_3, %c0_4] : memref<1x256xf32, #tpu.memory_space<vmem>>, vector<1x256xf32>
    %5 = vector.broadcast %4 : vector<1x256xf32> to vector<16x256xf32>
    %6 = arith.addf %3, %5 : vector<16x256xf32>
    %cst_5 = arith.constant 0.000000e+00 : f32
    %7 = vector.broadcast %cst_5 : f32 to vector<16x256xf32>
    %8 = arith.maximumf %6, %7 : vector<16x256xf32>
    %9 = arith.truncf %8 : vector<16x256xf32> to vector<16x256xbf16>
    %c0_6 = arith.constant 0 : index
    %c0_7 = arith.constant 0 : index
    %10 = vector.load %arg4[%c0_6, %c0_7] : memref<256x128xbf16, #tpu.memory_space<vmem>>, vector<256x128xbf16>
    %cst_8 = arith.constant dense<0.000000e+00> : vector<16x128xf32>
    %11 = tpu.matmul %9, %10, %cst_8 {dimension_numbers = #tpu.dot_dimension_numbers<[1], [0], [0], [1], [0, 0, 1, 1], [], []>} : vector<16x256xbf16>, vector<256x128xbf16>, vector<16x128xf32> -> vector<16x128xf32>
    %c0_9 = arith.constant 0 : index
    %c0_10 = arith.constant 0 : index
    %12 = vector.load %arg5[%c0_9, %c0_10] : memref<1x128xf32, #tpu.memory_space<vmem>>, vector<1x128xf32>
    %13 = vector.broadcast %12 : vector<1x128xf32> to vector<16x128xf32>
    %14 = arith.addf %11, %13 : vector<16x128xf32>
    %c0_11 = arith.constant 0 : index
    %c0_12 = arith.constant 0 : index
    %15 = vector.load %arg6[%c0_11, %c0_12] : memref<16x128xf32, #tpu.memory_space<vmem>>, vector<16x128xf32>
    tpu.vector_store %arg6[%c0_11, %c0_12], %14 {strides = array<i32>} : memref<16x128xf32, #tpu.memory_space<vmem>>, vector<16x128xf32>,
    return
  }
  func.func @transform_0(%arg0: i32) -> (i32, i32) {
    %c0_i32 = arith.constant 0 : i32
    %c0_i32_0 = arith.constant 0 : i32
    return %arg0, %c0_i32 : i32, i32
  }
  func.func @transform_1(%arg0: i32) -> (i32, i32) {
    %c0_i32 = arith.constant 0 : i32
    %c0_i32_0 = arith.constant 0 : i32
    %c0_i32_1 = arith.constant 0 : i32
    return %c0_i32, %c0_i32_0 : i32, i32
  }
  func.func @transform_2(%arg0: i32) -> (i32, i32) {
    %c0_i32 = arith.constant 0 : i32
    %c0_i32_0 = arith.constant 0 : i32
    %c0_i32_1 = arith.constant 0 : i32
    return %c0_i32, %c0_i32_0 : i32, i32
  }
  func.func @transform_3(%arg0: i32) -> (i32, i32) {
    %c0_i32 = arith.constant 0 : i32
    %c0_i32_0 = arith.constant 0 : i32
    %c0_i32_1 = arith.constant 0 : i32
    return %c0_i32, %c0_i32_0 : i32, i32
  }
  func.func @transform_4(%arg0: i32) -> (i32, i32) {
    %c0_i32 = arith.constant 0 : i32
    %c0_i32_0 = arith.constant 0 : i32
    %c0_i32_1 = arith.constant 0 : i32
    return %c0_i32, %c0_i32_0 : i32, i32
  }
  func.func @transform_5(%arg0: i32) -> (i32, i32) {
    %c0_i32 = arith.constant 0 : i32
    %c0_i32_0 = arith.constant 0 : i32
    return %arg0, %c0_i32 : i32, i32
  }
}

module attributes {stable_mosaic.version = 11 : i64} {
  func.func @_ffn_kernel_fused(%arg0: i32, %arg1: memref<16x96xf32, #tpu.memory_space<vmem>>, %arg2: memref<96x384xbf16, #tpu.memory_space<vmem>>, %arg3: memref<1x384xf32, #tpu.memory_space<vmem>>, %arg4: memref<384x96xbf16, #tpu.memory_space<vmem>>, %arg5: memref<1x96xf32, #tpu.memory_space<vmem>>, %arg6: memref<16x96xf32, #tpu.memory_space<vmem>>) attributes {dimension_semantics = [#tpu.dimension_semantics<parallel>], iteration_bounds = array<i64: 1>, scalar_prefetch = 0 : i64, scratch_operands = 0 : i64, tpu.core_type = #tpu.core_type<tc>, window_params = [{transform_indices = @transform_0, window_bounds = array<i64: 16, 96>}, {pipeline_mode = #tpu.pipeline_mode<synchronous>, transform_indices = @transform_1, window_bounds = array<i64: 96, 384>}, {pipeline_mode = #tpu.pipeline_mode<synchronous>, transform_indices = @transform_2, window_bounds = array<i64: 1, 384>}, {pipeline_mode = #tpu.pipeline_mode<synchronous>, transform_indices = @transform_3, window_bounds = array<i64: 384, 96>}, {pipeline_mode = #tpu.pipeline_mode<synchronous>, transform_indices = @transform_4, window_bounds = array<i64: 1, 96>}, {transform_indices = @transform_5, window_bounds = array<i64: 16, 96>}]} {
    %c0 = arith.constant 0 : index
    %c0_0 = arith.constant 0 : index
    %0 = vector.load %arg1[%c0, %c0_0] : memref<16x96xf32, #tpu.memory_space<vmem>>, vector<16x96xf32>
    %1 = arith.truncf %0 : vector<16x96xf32> to vector<16x96xbf16>
    %c0_1 = arith.constant 0 : index
    %c0_2 = arith.constant 0 : index
    %2 = vector.load %arg2[%c0_1, %c0_2] : memref<96x384xbf16, #tpu.memory_space<vmem>>, vector<96x384xbf16>
    %cst = arith.constant dense<0.000000e+00> : vector<16x384xf32>
    %3 = tpu.matmul %1, %2, %cst {dimension_numbers = #tpu.dot_dimension_numbers<[1], [0], [0], [1], [0, 0, 1, 1], [], []>} : vector<16x96xbf16>, vector<96x384xbf16>, vector<16x384xf32> -> vector<16x384xf32>
    %c0_3 = arith.constant 0 : index
    %c0_4 = arith.constant 0 : index
    %4 = vector.load %arg3[%c0_3, %c0_4] : memref<1x384xf32, #tpu.memory_space<vmem>>, vector<1x384xf32>
    %5 = vector.broadcast %4 : vector<1x384xf32> to vector<16x384xf32>
    %6 = arith.addf %3, %5 : vector<16x384xf32>
    %cst_5 = arith.constant 0.000000e+00 : f32
    %7 = vector.broadcast %cst_5 : f32 to vector<16x384xf32>
    %8 = arith.maximumf %6, %7 : vector<16x384xf32>
    %9 = arith.truncf %8 : vector<16x384xf32> to vector<16x384xbf16>
    %c0_6 = arith.constant 0 : index
    %c0_7 = arith.constant 0 : index
    %10 = vector.load %arg4[%c0_6, %c0_7] : memref<384x96xbf16, #tpu.memory_space<vmem>>, vector<384x96xbf16>
    %cst_8 = arith.constant dense<0.000000e+00> : vector<16x96xf32>
    %11 = tpu.matmul %9, %10, %cst_8 {dimension_numbers = #tpu.dot_dimension_numbers<[1], [0], [0], [1], [0, 0, 1, 1], [], []>} : vector<16x384xbf16>, vector<384x96xbf16>, vector<16x96xf32> -> vector<16x96xf32>
    %c0_9 = arith.constant 0 : index
    %c0_10 = arith.constant 0 : index
    %12 = vector.load %arg5[%c0_9, %c0_10] : memref<1x96xf32, #tpu.memory_space<vmem>>, vector<1x96xf32>
    %13 = vector.broadcast %12 : vector<1x96xf32> to vector<16x96xf32>
    %14 = arith.addf %11, %13 : vector<16x96xf32>
    %c0_11 = arith.constant 0 : index
    %c0_12 = arith.constant 0 : index
    %15 = vector.load %arg6[%c0_11, %c0_12] : memref<16x96xf32, #tpu.memory_space<vmem>>, vector<16x96xf32>
    tpu.vector_store %arg6[%c0_11, %c0_12], %14 {strides = array<i32>} : memref<16x96xf32, #tpu.memory_space<vmem>>, vector<16x96xf32>,
    return
  }
  func.func @transform_0(%arg0: i32) -> (i32, i32) {
    %c0_i32 = arith.constant 0 : i32
    %c0_i32_0 = arith.constant 0 : i32
    return %arg0, %c0_i32 : i32, i32
  }
  func.func @transform_1(%arg0: i32) -> (i32, i32) {
    %c0_i32 = arith.constant 0 : i32
    %c0_i32_0 = arith.constant 0 : i32
    %c0_i32_1 = arith.constant 0 : i32
    return %c0_i32, %c0_i32_0 : i32, i32
  }
  func.func @transform_2(%arg0: i32) -> (i32, i32) {
    %c0_i32 = arith.constant 0 : i32
    %c0_i32_0 = arith.constant 0 : i32
    %c0_i32_1 = arith.constant 0 : i32
    return %c0_i32, %c0_i32_0 : i32, i32
  }
  func.func @transform_3(%arg0: i32) -> (i32, i32) {
    %c0_i32 = arith.constant 0 : i32
    %c0_i32_0 = arith.constant 0 : i32
    %c0_i32_1 = arith.constant 0 : i32
    return %c0_i32, %c0_i32_0 : i32, i32
  }
  func.func @transform_4(%arg0: i32) -> (i32, i32) {
    %c0_i32 = arith.constant 0 : i32
    %c0_i32_0 = arith.constant 0 : i32
    %c0_i32_1 = arith.constant 0 : i32
    return %c0_i32, %c0_i32_0 : i32, i32
  }
  func.func @transform_5(%arg0: i32) -> (i32, i32) {
    %c0_i32 = arith.constant 0 : i32
    %c0_i32_0 = arith.constant 0 : i32
    return %arg0, %c0_i32 : i32, i32
  }
}

</mosaic_0001>

<bundles_post_ra>
// kernel: _ffn_fused.1
= control target key start
LH: loop header
LB: loop body
LE: loop exit
PB: predicated region body
PF: predicated region fallthrough
CT: control target
= control target key end

     0   :  { %10 = vsyncpa [#allocation3], 0  ;;  %s725_s0 = inlined_call_operand.hbm [shape: f32[16,128], index: 0, kind: input, shape index: {}]   ;;  %s726_s1 = inlined_call_operand.hbm [shape: bf16[128,256], index: 1, kind: input, shape index: {}]   ;;  %s727_s2 = inlined_call_operand.vmem [shape: f32[1,256], index: 2, kind: input, shape index: {}]   ;;  %s728_s3 = inlined_call_operand.hbm [shape: bf16[256,128], index: 3, kind: input, shape index: {}]   ;;  %s729_s4 = inlined_call_operand.vmem [shape: f32[1,128], index: 4, kind: input, shape index: {}]   ;;  %s730_s5 = inlined_call_operand.hbm [shape: f32[16,128], index: 5, kind: output, shape index: {}]  }
   0x1   :  { %11 = vsyncpa [#allocation6], 0 }
   0x2   :  { %12 = vsyncpa [#allocation4], 0  ;;  %s30_s20 = sshll.u32 %s726_s1, 4  ;;  %s660_s21 = smov [#allocation5]   ;;  %s31_s20 = int_to_ptr.hbm [resolvable:$true] %s30_s20 }
   0x3   :  { %s32_s22 = sshll.u32 %s660_s21, 4  ;;  %s17_s25 = sshll.u32 %s725_s0, 4  ;;  %s33_s22 = int_to_ptr.vmem [resolvable:$true] %s32_s22  ;;  %s18_s25 = int_to_ptr.hbm [resolvable:$true] %s17_s25 }
   0x4   :  { %s661_s26 = smov 128   ;;  %s662_s27 = smov 8  }
   0x5   :  { %38 = dma.hbm_to_vmem [thread:$0]  %s31_s20, 2048, %s33_s22, [#allocation6], %s661_s26, %s661_s26, %s662_s27  }
   0x6   :  { %s663_s28 = smov [#allocation2]   ;;  %s45_s1 = sshll.u32 %s728_s3, 4  ;;  %s46_s1 = int_to_ptr.hbm [resolvable:$true] %s45_s1 }
   0x7   :  { %s19_s29 = sshll.u32 %s663_s28, 4  ;;  %s664_s0 = smov [#allocation7]   ;;  %s20_s29 = int_to_ptr.vmem [resolvable:$true] %s19_s29 }
   0x8   :  { %25 = dma.hbm_to_vmem [thread:$0]  %s18_s25, 256, %s20_s29, [#allocation3], %s661_s26, %s661_s26, %s662_s27  }
   0x9   :  { %s47_s7 = sshll.u32 %s664_s0, 4  ;;  %s665_s8 = smov 64   ;;  %s48_s7 = int_to_ptr.vmem [resolvable:$true] %s47_s7 }
   0xa   :  { %s666_s9 = smov 4  }
   0xb   :  { %53 = dma.hbm_to_vmem [thread:$0]  %s46_s1, 2048, %s48_s7, [#allocation6], %s665_s8, %s665_s8, %s666_s9  }
   0xc   :  { %654 = dma.done.wait [#allocation3], 256  }
   0xd   :  { %655 = vsyncadd [#allocation3], 4294967040 }
   0xe   :  { %656 = dma.done.wait [#allocation6], 4096  }
   0xf   :  { %657 = vsyncadd [#allocation6], 4294963200  ;;  %v447_v0 = vld [vmem:[#allocation5 + $0x70] sm:$0xf]  ;;  %v532_v1 = vld [vmem:[#allocation5 + $0x74] sm:$0xf0] }
  0x10   :  { %v531_v2 = vld [vmem:[#allocation5 + $0x74] sm:$0xf]  ;;  %v448_v3 = vor.u32 %v532_v1, %v447_v0  ;;  %v449_v4 = vld [vmem:[#allocation5 + $0x78] sm:$0xf0]  ;;  %v439_v5 = vld [vmem:[#allocation5 + $0x60] sm:$0xf] }
  0x11   :  { %v530_v6 = vld [vmem:[#allocation5 + $0x64] sm:$0xf0]  ;;  %v452_v7 = vor.u32 %v531_v2, %v449_v4  ;;  %v529_v8 = vld [vmem:[#allocation5 + $0x64] sm:$0xf]  ;;  %v441_v9 = vld [vmem:[#allocation5 + $0x68] sm:$0xf0] }
  0x12   :  { %173 = vmatpush.bf16.msra.mxu0 %v448_v3  ;;  %v440_v10 = vor.u32 %v530_v6, %v439_v5  ;;  %v444_v11 = vor.u32 %v529_v8, %v441_v9  ;;  %v431_v12 = vld [vmem:[#allocation5 + $0x50] sm:$0xf]  ;;  %v528_v13 = vld [vmem:[#allocation5 + $0x54] sm:$0xf0]  ;;  %v527_v14 = vld [vmem:[#allocation5 + $0x54] sm:$0xf] }
  0x13   :  { %187 = vmatpush.bf16.msra.mxu1 %v452_v7  ;;  %v433_v15 = vld [vmem:[#allocation5 + $0x58] sm:$0xf0]  ;;  %v432_v16 = vor.u32 %v528_v13, %v431_v12  ;;  %v423_v18 = vld [vmem:[#allocation5 + $0x40] sm:$0xf]  ;;  %v526_v19 = vld [vmem:[#allocation5 + $0x44] sm:$0xf0] }
  0x14   :  { %v436_v17 = vor.u32 %v527_v14, %v433_v15  ;;  %v525_v20 = vld [vmem:[#allocation5 + $0x44] sm:$0xf]  ;;  %v425_v21 = vld [vmem:[#allocation5 + $0x48] sm:$0xf0]  ;;  %v424_v22 = vor.u32 %v526_v19, %v423_v18  ;;  %v540_v23 = vld [vmem:[#allocation7 + $0x38] sm:$0xff]  ;;  %s667_s12 = smov [#allocation8]  }
  0x15   :  { %v548_v24 = vld [vmem:[#allocation7 + $0x78] sm:$0xff]  ;;  %v428_v25 = vor.u32 %v525_v20, %v425_v21  ;;  %v415_v26 = vld [vmem:[#allocation5 + $0x30] sm:$0xf]  ;;  %v523_v28 = vld [vmem:[#allocation5 + $0x34] sm:$0xf]  ;;  %339 = vmatpush.bf16.msra.mxu2 %v540_v23  ;;  %s373_s13 = sshll.u32 %s667_s12, 4  ;;  %s374_s13 = int_to_ptr.vmem [resolvable:$true] %s373_s13 }
  0x16   :  { %174 = vmatpush.bf16.msra.mxu0 %v440_v10  ;;  %v524_v27 = vld [vmem:[#allocation5 + $0x34] sm:$0xf0]  ;;  %v417_v29 = vld [vmem:[#allocation5 + $0x38] sm:$0xf0]  ;;  %353 = vmatpush.bf16.msra.mxu3 %v548_v24  ;;  %v539_v30 = vld [vmem:[#allocation7 + $0x30] sm:$0xff]  ;;  %s375_s16 = sshll.u32 %s730_s5, 4  ;;  %s376_s16 = int_to_ptr.hbm [resolvable:$true] %s375_s16 }
  0x17   :  { %188 = vmatpush.bf16.msra.mxu1 %v444_v11  ;;  %v547_v31 = vld [vmem:[#allocation7 + $0x70] sm:$0xff]  ;;  %v416_v32 = vor.u32 %v524_v27, %v415_v26  ;;  %v420_v33 = vor.u32 %v523_v28, %v417_v29  ;;  %v407_v34 = vld [vmem:[#allocation5 + $0x20] sm:$0xf]  ;;  %v522_v35 = vld [vmem:[#allocation5 + $0x24] sm:$0xf0] }
  0x18   :  { %v521_v36 = vld [vmem:[#allocation5 + $0x24] sm:$0xf]  ;;  %v409_v37 = vld [vmem:[#allocation5 + $0x28] sm:$0xf0]  ;;  %v408_v40 = vor.u32 %v522_v35, %v407_v34  ;;  %v399_v42 = vld [vmem:[#allocation5 + $0x10] sm:$0xf] }
  0x19   :  { %340 = vmatpush.bf16.msra.mxu2 %v539_v30  ;;  %v538_v38 = vld [vmem:[#allocation7 + $0x28] sm:$0xff]  ;;  %v412_v41 = vor.u32 %v521_v36, %v409_v37  ;;  %v520_v43 = vld [vmem:[#allocation5 + $0x14] sm:$0xf0]  ;;  %v519_v44 = vld [vmem:[#allocation5 + $0x14] sm:$0xf] }
  0x1a   :  { %175 = vmatpush.bf16.msra.mxu0 %v432_v16  ;;  %354 = vmatpush.bf16.msra.mxu3 %v547_v31  ;;  %v546_v39 = vld [vmem:[#allocation7 + $0x68] sm:$0xff]  ;;  %v401_v45 = vld [vmem:[#allocation5 + $0x18] sm:$0xf0]  ;;  %v537_v46 = vld [vmem:[#allocation7 + $0x20] sm:$0xff]  ;;  %v400_v48 = vor.u32 %v520_v43, %v399_v42 }
  0x1b   :  { %189 = vmatpush.bf16.msra.mxu1 %v436_v17  ;;  %v545_v47 = vld [vmem:[#allocation7 + $0x60] sm:$0xff]  ;;  %v404_v49 = vor.u32 %v519_v44, %v401_v45  ;;  %v518_v51 = vld [vmem:[#allocation5 + $0x4] sm:$0xf0]  ;;  %v393_v53 = vld [vmem:[#allocation5 + $0x8] sm:$0xf0] }
  0x1c   :  { %v391_v50 = vld [vmem:[#allocation5] sm:$0xf]  ;;  %v517_v52 = vld [vmem:[#allocation5 + $0x4] sm:$0xf]  ;;  %v68_v55 = vld [vmem:[#allocation2] sm:$0xff] }
  0x1d   :  { %341 = vmatpush.bf16.msra.mxu2 %v538_v38  ;;  %v392_v54 = vor.u32 %v518_v51, %v391_v50  ;;  %v69_v56 = vld [vmem:[#allocation2 + $0x8] sm:$0xff]  ;;  %v396_v57 = vor.u32 %v517_v52, %v393_v53  ;;  %v535_v61 = vld [vmem:[#allocation7 + $0x10] sm:$0xff]  ;;  %v534_v63 = vld [vmem:[#allocation7 + $0x8] sm:$0xff] }
  0x1e   :  { %176 = vmatpush.bf16.msra.mxu0 %v424_v22  ;;  %355 = vmatpush.bf16.msra.mxu3 %v546_v39  ;;  %v70_v58 = vpack.c.bf16 %v69_v56, %v68_v55  ;;  %v536_v59 = vld [vmem:[#allocation7 + $0x18] sm:$0xff]  ;;  %v543_v62 = vld [vmem:[#allocation7 + $0x50] sm:$0xff]  ;;  %v542_v0 = vld [vmem:[#allocation7 + $0x48] sm:$0xff] }
  0x1f   :  { %190 = vmatpush.bf16.msra.mxu1 %v428_v25  ;;  %v544_v60 = vld [vmem:[#allocation7 + $0x58] sm:$0xff]  ;;  %v533_v1 = vld [vmem:[#allocation7] sm:$0xff]  ;;  %v87_v3 = vld [vmem:[%s727_s2] sm:$0x3] }
  0x20   :  { %v541_v2 = vld [vmem:[#allocation7 + $0x40] sm:$0xff]  ;;  %v89_v6 = vperm.slane %v87_v3, 0  ;;  %v90_v7 = vperm.slane %v87_v3, 1  ;;  %v557_v20 = vld [vmem:[%s729_s4] ss:$0 sm:$0xff] }
  0x21   :  { %342 = vmatpush.bf16.msra.mxu2 %v537_v46 }
  0x22   :  { %177 = vmatpush.bf16.msra.mxu0 %v416_v32  ;;  %356 = vmatpush.bf16.msra.mxu3 %v545_v47 }
  0x23   :  { %191 = vmatpush.bf16.msra.mxu1 %v420_v33 }
  0x25   :  { %343 = vmatpush.bf16.msra.mxu2 %v536_v59 }
  0x26   :  { %178 = vmatpush.bf16.msra.mxu0 %v408_v40  ;;  %357 = vmatpush.bf16.msra.mxu3 %v544_v60 }
  0x27   :  { %192 = vmatpush.bf16.msra.mxu1 %v412_v41 }
  0x29   :  { %344 = vmatpush.bf16.msra.mxu2 %v535_v61 }
  0x2a   :  { %179 = vmatpush.bf16.msra.mxu0 %v400_v48  ;;  %358 = vmatpush.bf16.msra.mxu3 %v543_v62 }
  0x2b   :  { %193 = vmatpush.bf16.msra.mxu1 %v404_v49 }
  0x2d   :  { %345 = vmatpush.bf16.msra.mxu2 %v534_v63 }
  0x2e   :  { %180 = vmatpush.bf16.msra.mxu0 %v392_v54  ;;  %359 = vmatpush.bf16.msra.mxu3 %v542_v0 }
  0x2f   :  { %194 = vmatpush.bf16.msra.mxu1 %v396_v57 }
  0x31   :  { %181 = vmatmul.bf16.vlgmr.msra.gmra.mxu0 %v70_v58  ;;  %346 = vmatpush.bf16.msra.mxu2 %v533_v1 }
  0x32   :  { %195 = vmatmul.bf16.vlgmr.msra.gmra.mxu1 %v70_v58  ;;  %360 = vmatpush.bf16.msra.mxu3 %v541_v2 }
  0xae   :  { %v182_v4 = vpop.f32.mrf.mxu0 }
  0xaf   :  { %v196_v5 = vpop.f32.mrf.mxu1  ;;  %v183_v8 = vadd.f32 %v182_v4, %v89_v6 }
  0xb0   :  { %v197_v9 = vadd.f32 %v196_v5, %v90_v7 }
  0xb1   :  { %v201_v14 = vmax.f32 %v183_v8, 0.0 }
  0xb2   :  { %v202_v16 = vmax.f32 %v197_v9, 0.0 }
  0xb6   :  { %v184_v10 = vpop.f32.mrf.mxu0 }
  0xb7   :  { %v185_v11 = vadd.f32 %v184_v10, %v89_v6  ;;  %v198_v12 = vpop.f32.mrf.mxu1 }
  0xb8   :  { %v199_v13 = vadd.f32 %v198_v12, %v90_v7 }
  0xb9   :  { %v203_v15 = vmax.f32 %v185_v11, 0.0 }
  0xba   :  { %v204_v17 = vmax.f32 %v199_v13, 0.0 }
  0xbb   :  { %v205_v18 = vpack.c.bf16 %v203_v15, %v201_v14 }
  0xbc   :  { %v206_v19 = vpack.c.bf16 %v204_v17, %v202_v16 }
  0xbd   :  { %347 = vmatmul.bf16.vlgmr.msra.gmra.mxu2 %v205_v18 }
  0xbe   :  { %361 = vmatmul.bf16.vlgmr.msra.gmra.mxu3 %v206_v19 }
 0x140   :  { %v348_v21 = vpop.f32.mrf.mxu2 }
 0x141   :  { %v349_v22 = vadd.f32 %v557_v20, %v348_v21  ;;  %v362_v23 = vpop.f32.mrf.mxu3 }
 0x143   :  { %v363_v24 = vadd.f32 %v362_v23, %v349_v22 }
 0x145   :  { %367 = vst [vmem:[#allocation8] sm:$0xff] %v363_v24 }
 0x148   :  { %v350_v25 = vpop.f32.mrf.mxu2 }
 0x149   :  { %v351_v26 = vadd.f32 %v557_v20, %v350_v25  ;;  %v364_v27 = vpop.f32.mrf.mxu3 }
 0x14b   :  { %v365_v28 = vadd.f32 %v364_v27, %v351_v26 }
 0x14d   :  { %368 = vst [vmem:[#allocation8 + $0x8] sm:$0xff] %v365_v28 }
 0x14e   :  { %381 = dma.vmem_to_hbm [thread:$0]  %s374_s13, 256, %s376_s16, [#allocation4], %s661_s26, %s661_s26, %s662_s27  }
 0x14f   :  { %658 = dma.done.wait [#allocation4], 256  }
 0x150   :  { %659 = vsyncadd [#allocation4], 4294967040 }
 0x151   :  { %386 = vsyncpa [#allocation3], 1 }
 0x152   :  { %387 = vsyncpa [#allocation6], 1 }
 0x153   :  { %388 = vsyncpa [#allocation4], 1 }

// kernel: _ffn_fused.1
= control target key start
LH: loop header
LB: loop body
LE: loop exit
PB: predicated region body
PF: predicated region fallthrough
CT: control target
= control target key end

     0   :  { %s942_s0 = inlined_call_operand.vmem [shape: f32[16,96], index: 0, kind: input, shape index: {}]   ;;  %s943_s1 = inlined_call_operand.vmem [shape: bf16[96,384], index: 1, kind: input, shape index: {}]   ;;  %s944_s2 = inlined_call_operand.vmem [shape: f32[1,384], index: 2, kind: input, shape index: {}]   ;;  %s945_s3 = inlined_call_operand.vmem [shape: bf16[384,96], index: 3, kind: input, shape index: {}]   ;;  %s946_s4 = inlined_call_operand.vmem [shape: f32[1,96], index: 4, kind: input, shape index: {}]   ;;  %s947_s5 = inlined_call_operand.hbm [shape: f32[16,96], index: 5, kind: output, shape index: {}]  }
   0x1   :  { %v528_v0 = vld [vmem:[%s943_s1 + $0x78] sm:$0xf]  ;;  %v653_v1 = vld [vmem:[%s943_s1 + $0x80] sm:$0xf0]  ;;  %v516_v2 = vld [vmem:[%s943_s1 + $0x60] sm:$0xf] }
   0x2   :  { %v529_v3 = vor.u32 %v653_v1, %v528_v0  ;;  %v650_v4 = vld [vmem:[%s943_s1 + $0x68] sm:$0xf0]  ;;  %v652_v5 = vld [vmem:[%s943_s1 + $0x7c] sm:$0xf]  ;;  %v530_v6 = vld [vmem:[%s943_s1 + $0x84] sm:$0xf0] }
   0x3   :  { %v517_v7 = vor.u32 %v650_v4, %v516_v2  ;;  %v533_v8 = vor.u32 %v652_v5, %v530_v6  ;;  %v649_v9 = vld [vmem:[%s943_s1 + $0x64] sm:$0xf]  ;;  %v518_v10 = vld [vmem:[%s943_s1 + $0x6c] sm:$0xf0]  ;;  %v504_v11 = vld [vmem:[%s943_s1 + $0x48] sm:$0xf] }
   0x4   :  { %159 = vmatpush.bf16.msra.mxu2 %v529_v3  ;;  %v647_v12 = vld [vmem:[%s943_s1 + $0x50] sm:$0xf0]  ;;  %v521_v13 = vor.u32 %v649_v9, %v518_v10  ;;  %v646_v14 = vld [vmem:[%s943_s1 + $0x4c] sm:$0xf]  ;;  %v506_v15 = vld [vmem:[%s943_s1 + $0x54] sm:$0xf0] }
   0x5   :  { %173 = vmatpush.bf16.msra.mxu1 %v533_v8  ;;  %v505_v16 = vor.u32 %v647_v12, %v504_v11  ;;  %v492_v17 = vld [vmem:[%s943_s1 + $0x30] sm:$0xf]  ;;  %v644_v18 = vld [vmem:[%s943_s1 + $0x38] sm:$0xf0]  ;;  %v509_v19 = vor.u32 %v646_v14, %v506_v15  ;;  %v643_v20 = vld [vmem:[%s943_s1 + $0x34] sm:$0xf] }
   0x6   :  { %v494_v21 = vld [vmem:[%s943_s1 + $0x3c] sm:$0xf0]  ;;  %v493_v22 = vor.u32 %v644_v18, %v492_v17  ;;  %v480_v23 = vld [vmem:[%s943_s1 + $0x18] sm:$0xf]  ;;  %v641_v24 = vld [vmem:[%s943_s1 + $0x20] sm:$0xf0] }
   0x7   :  { %v497_v25 = vor.u32 %v643_v20, %v494_v21 }
   0x8   :  { %160 = vmatpush.bf16.msra.mxu2 %v517_v7 }
   0x9   :  { %174 = vmatpush.bf16.msra.mxu1 %v521_v13 }
   0xc   :  { %161 = vmatpush.bf16.msra.mxu2 %v505_v16 }
   0xd   :  { %175 = vmatpush.bf16.msra.mxu1 %v509_v19 }
   0xe   :  { %10 = vsyncpa [#allocation3], 0  ;;  %v640_v26 = vld [vmem:[%s943_s1 + $0x1c] sm:$0xf]  ;;  %v482_v27 = vld [vmem:[%s943_s1 + $0x24] sm:$0xf0]  ;;  %v481_v28 = vor.u32 %v641_v24, %v480_v23 }
   0xf   :  { %v662_v29 = vld [vmem:[%s945_s3 + $0x38] sm:$0xff]  ;;  %v468_v31 = vld [vmem:[%s943_s1] sm:$0xf]  ;;  %v638_v32 = vld [vmem:[%s943_s1 + $0x8] sm:$0xf0]  ;;  %v485_v35 = vor.u32 %v640_v26, %v482_v27  ;;  %vm153_vm0 = vcmask 785408  }
  0x10   :  { %162 = vmatpush.bf16.msra.mxu2 %v493_v22  ;;  %v670_v30 = vld [vmem:[%s945_s3 + $0x78] sm:$0xff]  ;;  %v536_v33 = vld [vmem:[%s943_s1 + $0x80] sm:$0xf]  ;;  %v654_v34 = vld [vmem:[%s943_s1 + $0x88] sm:$0xf0]  ;;  %404 = vmatpush.bf16.msra.mxu3 %v662_v29  ;;  %v469_v40 = vor.u32 %v638_v32, %v468_v31  ;;  %s709_s14 = smov [#allocation2]  }
  0x11   :  { %176 = vmatpush.bf16.msra.mxu1 %v497_v25  ;;  %v661_v36 = vld [vmem:[%s945_s3 + $0x30] sm:$0xff]  ;;  %v637_v37 = vld [vmem:[%s943_s1 + $0x4] sm:$0xf]  ;;  %418 = vmatpush.bf16.msra.mxu0 %v670_v30  ;;  %v23_v42 = vld [vmem:[%s942_s0 + $0x8] sm:$0xff]  ;;  %v537_v43 = vor.u32 %v654_v34, %v536_v33  ;;  %s452_s15 = sshll.u32 %s709_s14, 4  ;;  %s454_s18 = sshll.u32 %s947_s5, 4  ;;  %s453_s15 = int_to_ptr.vmem [resolvable:$true] %s452_s15  ;;  %s455_s18 = int_to_ptr.hbm [resolvable:$true] %s454_s18 }
  0x12   :  { %v470_v38 = vld [vmem:[%s943_s1 + $0xc] sm:$0xf0]  ;;  %v22_v41 = vld [vmem:[%s942_s0] sm:$0xff]  ;;  %v524_v44 = vld [vmem:[%s943_s1 + $0x68] sm:$0xf]  ;;  %s711_s19 = smov 8  }
  0x13   :  { %v669_v39 = vld [vmem:[%s945_s3 + $0x70] sm:$0xff]  ;;  %v473_v46 = vor.u32 %v637_v37, %v470_v38  ;;  %v660_v47 = vld [vmem:[%s945_s3 + $0x28] sm:$0xff]  ;;  %v24_v48 = vpack.c.bf16 %v23_v42, %v22_v41  ;;  %v648_v52 = vld [vmem:[%s943_s1 + $0x58] sm:$0xf0] }
  0x14   :  { %163 = vmatpush.bf16.msra.mxu2 %v481_v28  ;;  %v651_v45 = vld [vmem:[%s943_s1 + $0x70] sm:$0xf0]  ;;  %405 = vmatpush.bf16.msra.mxu3 %v661_v36  ;;  %v668_v49 = vld [vmem:[%s945_s3 + $0x68] sm:$0xff]  ;;  %v512_v51 = vld [vmem:[%s943_s1 + $0x50] sm:$0xf] }
  0x15   :  { %177 = vmatpush.bf16.msra.mxu1 %v485_v35  ;;  %419 = vmatpush.bf16.msra.mxu0 %v669_v39  ;;  %v525_v50 = vor.u32 %v651_v45, %v524_v44  ;;  %v659_v53 = vld [vmem:[%s945_s3 + $0x20] sm:$0xff]  ;;  %v513_v55 = vor.u32 %v648_v52, %v512_v51  ;;  %v500_v56 = vld [vmem:[%s943_s1 + $0x38] sm:$0xf]  ;;  %v642_v60 = vld [vmem:[%s943_s1 + $0x28] sm:$0xf0] }
  0x16   :  { %v667_v54 = vld [vmem:[%s945_s3 + $0x60] sm:$0xff]  ;;  %v476_v62 = vld [vmem:[%s943_s1 + $0x8] sm:$0xf]  ;;  %v639_v63 = vld [vmem:[%s943_s1 + $0x10] sm:$0xf0] }
  0x17   :  { %v645_v57 = vld [vmem:[%s943_s1 + $0x40] sm:$0xf0]  ;;  %v488_v59 = vld [vmem:[%s943_s1 + $0x20] sm:$0xf]  ;;  %v477_v0 = vor.u32 %v639_v63, %v476_v62  ;;  %v658_v1 = vld [vmem:[%s945_s3 + $0x18] sm:$0xff] }
  0x18   :  { %164 = vmatpush.bf16.msra.mxu2 %v469_v40  ;;  %406 = vmatpush.bf16.msra.mxu3 %v660_v47  ;;  %v501_v58 = vor.u32 %v645_v57, %v500_v56  ;;  %v489_v61 = vor.u32 %v642_v60, %v488_v59  ;;  %v666_v2 = vld [vmem:[%s945_s3 + $0x58] sm:$0xff]  ;;  %v657_v3 = vld [vmem:[%s945_s3 + $0x10] sm:$0xff]  ;;  %v656_v6 = vld [vmem:[%s945_s3 + $0x8] sm:$0xff] }
  0x19   :  { %178 = vmatpush.bf16.msra.mxu1 %v473_v46  ;;  %420 = vmatpush.bf16.msra.mxu0 %v668_v49  ;;  %v678_v4 = vld [vmem:[%s945_s3 + $0xb8] sm:$0xff]  ;;  %v665_v5 = vld [vmem:[%s945_s3 + $0x50] sm:$0xff]  ;;  %v664_v8 = vld [vmem:[%s945_s3 + $0x48] sm:$0xff] }
  0x1a   :  { %v677_v7 = vld [vmem:[%s945_s3 + $0xb0] sm:$0xff]  ;;  %v655_v9 = vld [vmem:[%s945_s3] sm:$0xff]  ;;  %v676_v10 = vld [vmem:[%s945_s3 + $0xa8] sm:$0xff] }
  0x1b   :  { %538 = vmatmul.msk.bf16.vlgmr.msra.gmra.mxu2 %vm153_vm0, %v24_v48  ;;  %v663_v11 = vld [vmem:[%s945_s3 + $0x40] sm:$0xff]  ;;  %v674_v13 = vld [vmem:[%s945_s3 + $0x98] sm:$0xff]  ;;  %v673_v14 = vld [vmem:[%s945_s3 + $0x90] sm:$0xff] }
  0x1c   :  { %187 = vmatpush.bf16.msrb.mxu2 %v537_v43  ;;  %539 = vmatmul.msk.bf16.vlgmr.msra.gmra.mxu1 %vm153_vm0, %v24_v48  ;;  %v675_v12 = vld [vmem:[%s945_s3 + $0xa0] sm:$0xff]  ;;  %v672_v15 = vld [vmem:[%s945_s3 + $0x88] sm:$0xff] }
  0x1d   :  { %407 = vmatpush.bf16.msra.mxu3 %v659_v53  ;;  %421 = vmatpush.bf16.msra.mxu0 %v667_v54  ;;  %v49_v16 = vld [vmem:[%s944_s2] sm:$0x7] }
  0x1e   :  { %432 = vmatpush.bf16.msrb.mxu1 %v678_v4  ;;  %v52_v18 = vperm.slane %v49_v16, 1  ;;  %v671_v19 = vld [vmem:[%s945_s3 + $0x80] sm:$0xff]  ;;  %v51_v22 = vperm.slane %v49_v16, 0  ;;  %v53_v35 = vperm.slane %v49_v16, 2 }
  0x1f   :  { %v682_v43 = vld [vmem:[%s946_s4] ss:$0 sm:$0xff]  ;;  %s710_s4 = smov 128  }
  0x20   :  { %188 = vmatpush.bf16.msrb.mxu2 %v525_v50 }
  0x21   :  { %408 = vmatpush.bf16.msra.mxu3 %v658_v1  ;;  %422 = vmatpush.bf16.msra.mxu0 %v666_v2 }
  0x22   :  { %433 = vmatpush.bf16.msrb.mxu1 %v677_v7 }
  0x24   :  { %189 = vmatpush.bf16.msrb.mxu2 %v513_v55 }
  0x25   :  { %409 = vmatpush.bf16.msra.mxu3 %v657_v3  ;;  %423 = vmatpush.bf16.msra.mxu0 %v665_v5 }
  0x26   :  { %434 = vmatpush.bf16.msrb.mxu1 %v676_v10 }
  0x28   :  { %190 = vmatpush.bf16.msrb.mxu2 %v501_v58 }
  0x29   :  { %410 = vmatpush.bf16.msra.mxu3 %v656_v6  ;;  %424 = vmatpush.bf16.msra.mxu0 %v664_v8 }
  0x2a   :  { %435 = vmatpush.bf16.msrb.mxu1 %v675_v12 }
  0x2c   :  { %191 = vmatpush.bf16.msrb.mxu2 %v489_v61 }
  0x2d   :  { %411 = vmatpush.bf16.msra.mxu3 %v655_v9  ;;  %425 = vmatpush.bf16.msra.mxu0 %v663_v11 }
  0x2e   :  { %436 = vmatpush.bf16.msrb.mxu1 %v674_v13 }
  0x30   :  { %192 = vmatpush.bf16.msrb.mxu2 %v477_v0 }
  0x32   :  { %437 = vmatpush.bf16.msrb.mxu1 %v673_v14 }
  0x33   :  { %540 = vmatmul.msk.bf16.vlgmr.msrb.gmra.mxu2 %vm153_vm0, %v24_v48 }
  0x36   :  { %438 = vmatpush.bf16.msrb.mxu1 %v672_v15 }
  0x3a   :  { %439 = vmatpush.bf16.msrb.mxu1 %v671_v19 }
  0x99   :  { %v180_v17 = vpop.f32.mrf.mxu1 }
  0x9a   :  { %v181_v21 = vadd.f32 %v180_v17, %v52_v18 }
  0x9c   :  { %v200_v24 = vmax.f32 %v181_v21, 0.0 }
  0x9e   :  { %v166_v20 = vpop.f32.mrf.mxu2 }
  0x9f   :  { %v167_v26 = vadd.f32 %v166_v20, %v51_v22 }
  0xa1   :  { %v182_v23 = vpop.f32.mrf.mxu1  ;;  %v199_v31 = vmax.f32 %v167_v26, 0.0 }
  0xa2   :  { %v183_v25 = vadd.f32 %v182_v23, %v52_v18 }
  0xa4   :  { %v203_v27 = vmax.f32 %v183_v25, 0.0 }
  0xa6   :  { %v168_v28 = vpop.f32.mrf.mxu2  ;;  %v206_v30 = vpack.c.bf16 %v203_v27, %v200_v24 }
  0xa7   :  { %v169_v29 = vadd.f32 %v168_v28, %v51_v22 }
  0xa8   :  { %426 = vmatmul.bf16.vlgmr.msra.gmra.mxu0 %v206_v30 }
  0xa9   :  { %v202_v32 = vmax.f32 %v169_v29, 0.0 }
  0xab   :  { %v205_v33 = vpack.c.bf16 %v202_v32, %v199_v31 }
  0xad   :  { %412 = vmatmul.bf16.vlgmr.msra.gmra.mxu3 %v205_v33 }
  0xb6   :  { %v194_v34 = vpop.f32.mrf.mxu2 }
  0xb7   :  { %v195_v36 = vadd.f32 %v194_v34, %v53_v35 }
  0xb9   :  { %v201_v39 = vmax.f32 %v195_v36, 0.0 }
  0xbe   :  { %v196_v37 = vpop.f32.mrf.mxu2 }
  0xbf   :  { %v197_v38 = vadd.f32 %v196_v37, %v53_v35 }
  0xc1   :  { %v204_v40 = vmax.f32 %v197_v38, 0.0 }
  0xc3   :  { %v207_v41 = vpack.c.bf16 %v204_v40, %v201_v39 }
  0xc5   :  { %440 = vmatmul.bf16.vlgmr.msrb.gmra.mxu1 %v207_v41 }
 0x125   :  { %v427_v45 = vpop.f32.mrf.mxu0 }
 0x12d   :  { %v429_v51 = vpop.f32.mrf.mxu0 }
 0x130   :  { %v413_v42 = vpop.f32.mrf.mxu3 }
 0x131   :  { %v414_v44 = vadd.f32 %v682_v43, %v413_v42 }
 0x133   :  { %v428_v46 = vadd.f32 %v427_v45, %v414_v44 }
 0x138   :  { %v415_v47 = vpop.f32.mrf.mxu3 }
 0x139   :  { %v416_v50 = vadd.f32 %v682_v43, %v415_v47 }
 0x13b   :  { %v430_v52 = vadd.f32 %v429_v51, %v416_v50 }
 0x142   :  { %v441_v48 = vpop.f32.mrf.mxu1 }
 0x143   :  { %v442_v49 = vadd.f32 %v441_v48, %v428_v46 }
 0x145   :  { %446 = vst.msk [vmem:[#allocation2] sm:$0xff] %vm153_vm0, %v442_v49 }
 0x14a   :  { %v443_v53 = vpop.f32.mrf.mxu1 }
 0x14b   :  { %v444_v54 = vadd.f32 %v443_v53, %v430_v52 }
 0x14d   :  { %447 = vst.msk [vmem:[#allocation2 + $0x8] sm:$0xff] %vm153_vm0, %v444_v54 }
 0x14e   :  { %460 = dma.vmem_to_hbm [thread:$0]  %s453_s15, 256, %s455_s18, [#allocation3], %s710_s4, %s710_s4, %s711_s19  }
 0x14f   :  { %707 = dma.done.wait [#allocation3], 256  }
 0x150   :  { %708 = vsyncadd [#allocation3], 4294967040 }
 0x151   :  { %465 = vsyncpa [#allocation3], 1 }

</bundles_post_ra>
